<compile_context>
chip_gen: v7x
topology: tpu7x:2x2x1
jax: 0.10.0
libtpu: 0.0.40
codegen_flags: <defaults>
</compile_context>

<pallas_src>
import jax
import jax.numpy as jnp
from jax.experimental import pallas as pl
from jax.experimental.pallas import tpu as pltpu


def _round_up(x: int, m: int) -> int:
    return (x + m - 1) // m * m


def _patch_embed_kernel(x_ref, w_ref, b_ref, o_ref):
    # x_ref: (TM, Kp)  row-tile of flattened patches (compute dtype)
    # w_ref: (Kp, Np)  projection weight (resident across all grid steps)
    # b_ref: (1, Np)   projection bias in f32 (resident)
    # o_ref: (TM, Np)  output tile (lane-dense: Np % 128 == 0)
    acc = jnp.dot(x_ref[...], w_ref[...],
                  preferred_element_type=jnp.float32,
                  precision=jax.lax.Precision.HIGHEST)
    o_ref[...] = (acc + b_ref[...]).astype(o_ref.dtype)


def _choose_row_tile(m: int, align: int, tm_max: int):
    """Pick a row tile TM, preferring exact divisors of M (no padding, no
    output-slice copy) and >= 2 grid steps (even count when cheap) so the
    "parallel" axis can be sharded across both v7x TensorCores."""
    tm_max = max(align, tm_max)
    best_any = 0
    best_even = 0
    d = align
    limit = min(tm_max, m)
    while d <= limit:
        if m % d == 0 and m // d >= 2:
            best_any = d
            if (m // d) % 2 == 0:
                best_even = d
        d += align
    if best_even and 2 * best_even >= best_any:
        return best_even, m
    if best_any:
        return best_any, m
    if m <= tm_max:                          # tiny input: single padded tile
        tm = _round_up(m, align)
        return tm, tm
    n_tiles = pl.cdiv(m, tm_max)             # fallback: balanced padded tiles
    tm = _round_up(pl.cdiv(m, n_tiles), align)
    return tm, _round_up(m, tm)


def vit_patch_embeddings(pixel_values, weight, bias, *, patch_size,
                         compute_dtype=None, out_dtype=None):
    """Forward of ViTPatchEmbeddings.

    pixel_values: (B, C, H, W) NCHW; weight: (hidden, C, P, P) torch Conv2d
    layout; bias: (hidden,). Returns (B, num_patches, hidden).

    compute_dtype: dtype fed to the MXU (pixels & weight are cast to it);
      accumulation is always f32. Defaults to result_type(pixels, weight).
      Pass jnp.bfloat16 to halve HBM traffic on v5e/v6e/v7x.
    out_dtype: output dtype; defaults to compute_dtype (documented decision:
      the embedding inherits the matmul input dtype, like torch under autocast).
    """
    B, C, H, W = pixel_values.shape
    hidden = weight.shape[0]
    P = patch_size
    Hp, Wp = H // P, W // P
    num_patches = Hp * Wp

    if compute_dtype is None:
        compute_dtype = jnp.result_type(pixel_values.dtype, weight.dtype)
    compute_dtype = jnp.dtype(compute_dtype)
    if out_dtype is None:
        out_dtype = compute_dtype
    out_dtype = jnp.dtype(out_dtype)

    # --- patch extraction (pure reshape/transpose, no compute) ---
    # (B, C, Hp, P, Wp, P) -> (B, Hp, Wp, C, P, P) -> (B*num_patches, C*P*P)
    # Done in the compute dtype so the one extra HBM pass is half-size for bf16.
    x = pixel_values.astype(compute_dtype)
    x = x.reshape(B, C, Hp, P, Wp, P)
    x = jnp.transpose(x, (0, 2, 4, 1, 3, 5))
    x = x.reshape(B * num_patches, C * P * P)

    # Conv weight (hidden, C, P, P) -> (C*P*P, hidden); the (C, P, P) flatten
    # order matches the patch flatten order above, so this reproduces the conv.
    w = weight.astype(compute_dtype).reshape(hidden, C * P * P).T
    b = bias.astype(jnp.float32).reshape(1, hidden)

    M, K = x.shape
    N = hidden
    in_isz = compute_dtype.itemsize
    out_isz = out_dtype.itemsize

    # --- padding for lane-dense output and clean MXU contraction ---
    Np = _round_up(N, 128)                     # no-op for real ViT hiddens
    Kp = _round_up(K, 128) if K > 128 else K   # e.g. patch-14: 588 -> 640

    # --- row tiling ---
    # Sub-32-bit dtypes pack rows into sublanes; align TM to the packing.
    align = max(8, 32 // in_isz)
    # VMEM budget: double-buffered x/out row tiles plus the constant-index
    # weight/bias (still double-buffered by the default pipeline). Keep the
    # footprint <= ~40 MiB so the limit request stays < 48 MiB (v7x: 64 MiB/TC).
    fixed_bytes = 2 * (Kp * Np * in_isz + Np * 4)
    per_row_bytes = 2 * (Kp * in_isz + Np * out_isz)
    budget = 40 * 1024 * 1024
    tm_budget = max(align, (budget - fixed_bytes) // max(per_row_bytes, 1))
    TM_MAX = max(align, min(2048, (tm_budget // align) * align))
    TM, Mp = _choose_row_tile(M, align, TM_MAX)

    if Mp != M or Kp != K:
        x = jnp.pad(x, ((0, Mp - M), (0, Kp - K)))
    if Kp != K or Np != N:
        w = jnp.pad(w, ((0, Kp - K), (0, Np - N)))
    if Np != N:
        b = jnp.pad(b, ((0, 0), (0, Np - N)))

    footprint = fixed_bytes + TM * per_row_bytes
    vmem_limit_bytes = int(min(48 * 1024 * 1024,
                               max(32 * 1024 * 1024, footprint * 3 // 2)))

    out = pl.pallas_call(
        _patch_embed_kernel,
        out_shape=jax.ShapeDtypeStruct((Mp, Np), out_dtype),
        grid_spec=pltpu.PrefetchScalarGridSpec(
            num_scalar_prefetch=0,
            grid=(Mp // TM,),
            in_specs=[
                pl.BlockSpec((TM, Kp), lambda i: (i, 0)),   # patches row-tile
                pl.BlockSpec((Kp, Np), lambda i: (0, 0)),   # weight, resident
                pl.BlockSpec((1, Np), lambda i: (0, 0)),    # bias (f32), resident
            ],
            out_specs=pl.BlockSpec((TM, Np), lambda i: (i, 0)),
        ),
        compiler_params=pltpu.CompilerParams(
            dimension_semantics=("parallel",),
            vmem_limit_bytes=vmem_limit_bytes,
        ),
    )(x, w, b)

    # TODO(synk): move patch extraction fully into the kernel (grid over rows of
    # patches with a (TB, C, P*rows, W) BlockSpec on the raw NCHW array — C*TB
    # contiguous HBM segments — and the (C,P,W)->(Wp, C*P*P) shuffle on-chip) to
    # drop the remaining extra HBM pass; current Mosaic minor-dim reshape support
    # makes that lowering risky, so the safe wrapper-side pass is kept.
    # TODO(synk): for hidden >= ~1536 add a second "parallel" N grid axis
    # (TN=256-512) and pipeline_mode=pl.Buffered(1) on the resident weight so TM
    # stays large within v7x's 64 MiB VMEM.

    if Mp != M or Np != N:
        out = out[:M, :N]        # no-op whenever TM divides M and hidden % 128 == 0
    return out.reshape(B, num_patches, hidden)


if __name__ == "__main__":
    # Small config consistent with the module:
    # image_size=16, patch_size=4, num_channels=4, hidden_size=32 -> num_patches=16
    B, C, IMG, P, HID = 2, 4, 16, 4, 32

    key = jax.random.PRNGKey(0)
    k_x, k_w, k_b = jax.random.split(key, 3)

    pixel_values = jax.random.normal(k_x, (B, C, IMG, IMG), dtype=jnp.float32)
    # nn.Conv2d(num_channels, hidden_size, kernel_size=P, stride=P) parameters.
    fan_in = C * P * P
    weight = jax.random.normal(k_w, (HID, C, P, P), dtype=jnp.float32) / jnp.sqrt(fan_in)
    bias = jax.random.normal(k_b, (HID,), dtype=jnp.float32) * 0.02

    fwd = jax.jit(vit_patch_embeddings,
                  static_argnames=("patch_size", "compute_dtype", "out_dtype"))

    # f32 path (matches the PyTorch module's default dtype).
    emb = jax.block_until_ready(fwd(pixel_values, weight, bias, patch_size=P))

    # Reference: lax conv with the same semantics as torch Conv2d(stride=kernel).
    ref = jax.lax.conv_general_dilated(
        pixel_values, weight, window_strides=(P, P), padding="VALID",
        dimension_numbers=("NCHW", "OIHW", "NCHW"),
        precision=jax.lax.Precision.HIGHEST,
    ) + bias.reshape(1, HID, 1, 1)
    ref = ref.reshape(B, HID, -1).transpose(0, 2, 1)  # flatten(2).transpose(1,2)

    assert emb.shape == (B, (IMG // P) ** 2, HID), emb.shape
    assert emb.dtype == jnp.float32, emb.dtype
    assert jnp.allclose(emb, ref, atol=2e-2, rtol=2e-2), "f32 mismatch vs reference"

    # bf16 fast path (halves HBM traffic; accumulation stays f32 in the kernel).
    emb_bf16 = jax.block_until_ready(
        fwd(pixel_values, weight, bias, patch_size=P, compute_dtype=jnp.bfloat16))
    assert emb_bf16.shape == (B, (IMG // P) ** 2, HID), emb_bf16.shape
    assert emb_bf16.dtype == jnp.bfloat16, emb_bf16.dtype
    assert jnp.allclose(emb_bf16.astype(jnp.float32), ref, atol=0.1, rtol=0.1), \
        "bf16 mismatch vs reference"

    print("KERNEL_OK")
</pallas_src>

<mosaic_0001>
module attributes {stable_mosaic.version = 11 : i64} {
  func.func @_patch_embed_kernel(%arg0: i32, %arg1: memref<16x64xf32, #tpu.memory_space<vmem>>, %arg2: memref<64x128xf32, #tpu.memory_space<vmem>>, %arg3: memref<1x128xf32, #tpu.memory_space<vmem>>, %arg4: memref<16x128xf32, #tpu.memory_space<vmem>>) attributes {dimension_semantics = [#tpu.dimension_semantics<parallel>], iteration_bounds = array<i64: 2>, scalar_prefetch = 0 : i64, scratch_operands = 0 : i64, tpu.core_type = #tpu.core_type<tc>, window_params = [{transform_indices = @transform_0, window_bounds = array<i64: 16, 64>}, {pipeline_mode = #tpu.pipeline_mode<synchronous>, transform_indices = @transform_1, window_bounds = array<i64: 64, 128>}, {pipeline_mode = #tpu.pipeline_mode<synchronous>, transform_indices = @transform_2, window_bounds = array<i64: 1, 128>}, {transform_indices = @transform_3, window_bounds = array<i64: 16, 128>}]} {
    %c0 = arith.constant 0 : index
    %c0_0 = arith.constant 0 : index
    %0 = vector.load %arg1[%c0, %c0_0] : memref<16x64xf32, #tpu.memory_space<vmem>>, vector<16x64xf32>
    %c0_1 = arith.constant 0 : index
    %c0_2 = arith.constant 0 : index
    %1 = vector.load %arg2[%c0_1, %c0_2] : memref<64x128xf32, #tpu.memory_space<vmem>>, vector<64x128xf32>
    %cst = arith.constant dense<0.000000e+00> : vector<16x128xf32>
    %2 = tpu.matmul %0, %1, %cst {dimension_numbers = #tpu.dot_dimension_numbers<[1], [0], [0], [1], [0, 0, 1, 1], [], []>, precision = #tpu.contract_precision<fp32>} : vector<16x64xf32>, vector<64x128xf32>, vector<16x128xf32> -> vector<16x128xf32>
    %c0_3 = arith.constant 0 : index
    %c0_4 = arith.constant 0 : index
    %3 = vector.load %arg3[%c0_3, %c0_4] : memref<1x128xf32, #tpu.memory_space<vmem>>, vector<1x128xf32>
    %4 = vector.broadcast %3 : vector<1x128xf32> to vector<16x128xf32>
    %5 = arith.addf %2, %4 : vector<16x128xf32>
    %c0_5 = arith.constant 0 : index
    %c0_6 = arith.constant 0 : index
    %6 = vector.load %arg4[%c0_5, %c0_6] : memref<16x128xf32, #tpu.memory_space<vmem>>, vector<16x128xf32>
    tpu.vector_store %arg4[%c0_5, %c0_6], %5 {strides = array<i32>} : memref<16x128xf32, #tpu.memory_space<vmem>>, vector<16x128xf32>,
    return
  }
  func.func @transform_0(%arg0: i32) -> (i32, i32) {
    %c0_i32 = arith.constant 0 : i32
    %c0_i32_0 = arith.constant 0 : i32
    return %arg0, %c0_i32 : i32, i32
  }
  func.func @transform_1(%arg0: i32) -> (i32, i32) {
    %c0_i32 = arith.constant 0 : i32
    %c0_i32_0 = arith.constant 0 : i32
    %c0_i32_1 = arith.constant 0 : i32
    return %c0_i32, %c0_i32_0 : i32, i32
  }
  func.func @transform_2(%arg0: i32) -> (i32, i32) {
    %c0_i32 = arith.constant 0 : i32
    %c0_i32_0 = arith.constant 0 : i32
    %c0_i32_1 = arith.constant 0 : i32
    return %c0_i32, %c0_i32_0 : i32, i32
  }
  func.func @transform_3(%arg0: i32) -> (i32, i32) {
    %c0_i32 = arith.constant 0 : i32
    %c0_i32_0 = arith.constant 0 : i32
    return %arg0, %c0_i32 : i32, i32
  }
}

</mosaic_0001>

<bundles_post_ra>
// kernel: vit_patch_embeddings.1
= control target key start
LH: loop header
LB: loop body
LE: loop exit
PB: predicated region body
PF: predicated region fallthrough
CT: control target
= control target key end

     0   :  { %8 = vsyncpa [#allocation3], 0  ;;  %s1503_s0 = inlined_call_operand.vmem [shape: f32[32,64], index: 0, kind: input, shape index: {}]   ;;  %s1504_s1 = inlined_call_operand.vmem [shape: f32[64,128], index: 1, kind: input, shape index: {}]   ;;  %s1505_s2 = inlined_call_operand.vmem [shape: f32[1,128], index: 2, kind: input, shape index: {}]   ;;  %s1506_s3 = inlined_call_operand.hbm [shape: f32[32,128], index: 3, kind: output, shape index: {}]  }
   0x1   :  { %10 = vsyncpa [#allocation3 + $0x1], 0  ;;  %s1278_s12 = smov 0   ;;  %s1280_s13 = smov 0  }
   0x2   :  { %s1282_s14 = smov 0   ;;  %s1284_s15 = smov 0  }
   0x3 LB: > { %s1299_s16 = sadd.s32 4294967295, %s1253_s15   ;;  %s854_s17 = sadd.s32 4294967294, %s1253_s15   ;;  %s1253_s15 = sphi %s1284_s15, %s1512_s15   ;;  %s1249_s14 = sphi %s1282_s14, %s1511_s14   ;;  %s1245_s13 = sphi %s1280_s13, %s1510_s13   ;;  %s1241_s12 = sphi %s1278_s12, %s1509_s12  }
   0x4   : > { %s1303_s18 = sadd.s32 1, %s1253_s15   ;;  %s91_s19 = sadd.s32 1, %s1249_s14 }
   0x5   : > { %s88_s20 = ssub.s32 %s1253_s15, %s1303_s18  ;;  %p101_p0 = scmp.ne.s32.totalorder %s1249_s14, %s1245_s13 }
   0x6   : > { %p89_p1 = scmp.eq.s32.totalorder %s88_s20, 0  ;;  %p102_p2 = scmp.eq.s32.totalorder %s1299_s16, 1 }
   0x7   : > { %p107_p3 = scmp.ne.s32.totalorder %s1245_s13, %s1241_s12  ;;  %p108_p4 = scmp.eq.s32.totalorder %s854_s17, 1 }
   0x8   : > { %s1314_s21 = scalar_select %p89_p1, %s1249_s14, %s91_s19  }
   0x9   : > { %p1316_p5 = por %p102_p2, %p101_p0  ;;  %p1320_p6 = por %p108_p4, %p107_p3 }
   0xa   : > { %p857_p7 = scmp.ge.s32.totalorder %s1253_s15, 1  ;;  %p141_p8 = scmp.lt.s32.totalorder %s1253_s15, 3 }
   0xc   : > { %p142_p9 = pnand %p857_p7, %p141_p8 }
   0xd   : > { %v174_v0 = vld [vmem:[%s1504_s1] sm:$0xff] (!%p142_p9)  ;;  %v175_v1 = vld [vmem:[%s1504_s1 + $0x8] sm:$0xff] (!%p142_p9)  ;;  %v176_v2 = vld [vmem:[%s1504_s1 + $0x10] sm:$0xff] (!%p142_p9)  ;;  %s859_s30 = sshll.u32 (!%p142_p9), %s1299_s16, 1  ;;  %vm189_vm0 = vcmask (!%p142_p9), 523264   ;;  %s162_s27 = sand.u32 (!%p142_p9), 1, %s1245_s13  }
   0xe   : > { %145 = sbr.rel (%p142_p9) target bundleno = 301 (0x12d), region = 32  ;;  %v197_v3 = vand.u32 (!%p142_p9), 4294901760, %v174_v0  ;;  %v200_v4 = vand.u32 (!%p142_p9), 4294901760, %v175_v1  ;;  %v177_v5 = vld [vmem:[%s1504_s1 + $0x18] sm:$0xff] (!%p142_p9)  ;;  %v203_v6 = vand.u32 (!%p142_p9), 4294901760, %v176_v2  ;;  %v178_v7 = vld [vmem:[%s1504_s1 + $0x20] sm:$0xff] (!%p142_p9) }
   0xf   : > { %v179_v8 = vld [vmem:[%s1504_s1 + $0x28] sm:$0xff] (!%p142_p9)  ;;  %v206_v9 = vand.u32 (!%p142_p9), 4294901760, %v177_v5  ;;  %v209_v10 = vand.u32 (!%p142_p9), 4294901760, %v178_v7  ;;  %v180_v11 = vld [vmem:[%s1504_s1 + $0x30] sm:$0xff] (!%p142_p9)  ;;  %v181_v12 = vld [vmem:[%s1504_s1 + $0x38] sm:$0xff] (!%p142_p9)  ;;  %p166_p10 = scmp.lt.s32.totalorder (!%p142_p9), %s859_s30, 3 }
  0x10   : > { %v1351_v13 = vpack.c.bf16 (!%p142_p9), %v200_v4, %v197_v3  ;;  %v212_v14 = vand.u32 (!%p142_p9), 4294901760, %v179_v8  ;;  %v215_v15 = vand.u32 (!%p142_p9), 4294901760, %v180_v11  ;;  %v1353_v16 = vsub.f32 (!%p142_p9), %v174_v0, %v197_v3  ;;  %s858_s28 = sshll.u32 (!%p142_p9), %s162_s27, 4  ;;  %s867_s6 = sshll.u32 (!%p142_p9), %s1299_s16, 8 }
  0x11   : > { %v1355_v17 = vpack.c.bf16 (!%p142_p9), %v206_v9, %v203_v6  ;;  %v218_v18 = vand.u32 (!%p142_p9), 4294901760, %v181_v12  ;;  %v1357_v19 = vsub.f32 (!%p142_p9), %v175_v1, %v200_v4  ;;  %v1359_v20 = vsub.f32 (!%p142_p9), %v176_v2, %v203_v6  ;;  %s164_s4 = scalar_lea.vmem (!%p142_p9), [#allocation2], %s858_s28  ;;  %s1460_s9 = scalar_lea.hbm (!%p142_p9), %s1506_s3, %s867_s6 }
  0x12   : > { %1043 = vmatprep.subr.bf16.mxu1 (!%p142_p9), %v1351_v13  ;;  %1091 = vmatprep.subr.bf16.mxu0 (!%p142_p9), %v1351_v13  ;;  %v292_v21 = vand.u32 (!%p142_p9), 4294901760, %v1353_v16  ;;  %v1364_v22 = vsub.f32 (!%p142_p9), %v177_v5, %v206_v9  ;;  %v1370_v25 = vsub.f32 (!%p142_p9), %v178_v7, %v209_v10  ;;  %v1374_v26 = vpack.c.bf16 (!%p142_p9), %v212_v14, %v209_v10  ;;  %s792_s5 = sshll.u32 (!%p142_p9), %s164_s4, 4  ;;  %s1462_s10 = scalar_lea.sflag (!%p142_p9), [#allocation3], %s162_s27  ;;  %s1455_s5 = int_to_ptr.vmem [resolvable:$true] %s792_s5 }
  0x13   : > { %1045 = vmatpush3.bf16.msra.mxu1 (!%p142_p9), %v1351_v13  ;;  %1093 = vmatpush3.bf16.msra.mxu0 (!%p142_p9), %v1351_v13  ;;  %v299_v23 = vand.u32 (!%p142_p9), 4294901760, %v1357_v19  ;;  %v306_v24 = vand.u32 (!%p142_p9), 4294901760, %v1359_v20  ;;  %v1381_v29 = vsub.f32 (!%p142_p9), %v179_v8, %v212_v14  ;;  %v1383_v30 = vpack.c.bf16 (!%p142_p9), %v218_v18, %v215_v15  ;;  %v861_v14 = vld [vmem:[%s1505_s2] ss:$0 sm:$0xff] (!%p142_p9)  ;;  %s1191_s16 = scalar_lea.vmem (!%p142_p9), %s1455_s5, 256  ;;  %s1255_s11 = smov (!%p142_p9), [#allocation2]  }
  0x14   : > { %1047 = vmatprep.subr.bf16.mxu1 (!%p142_p9), %v1355_v17  ;;  %1095 = vmatprep.subr.bf16.mxu0 (!%p142_p9), %v1355_v17  ;;  %v293_v27 = vsub.f32 (!%p142_p9), %v1353_v16, %v292_v21  ;;  %v313_v28 = vand.u32 (!%p142_p9), 4294901760, %v1364_v22  ;;  %v1389_v37 = vsub.f32 (!%p142_p9), %v180_v11, %v215_v15  ;;  %v320_v41 = vand.u32 (!%p142_p9), 4294901760, %v1370_v25  ;;  %p1192_p11 = scmp.ne.s32.totalorder (!%p142_p9), %s1455_s5, %s1191_s16  ;;  %s1195_s17 = sshll.u32 (!%p142_p9), %s1255_s11, 4  ;;  %s1196_s17 = int_to_ptr.vmem [resolvable:$false] %s1195_s17 }
  0x15   : > { %s1514_s30 = smov (!%p166_p10, %s859_s30), 3  ;;  %v300_v33 = vsub.f32 %v1357_v19, %v299_v23  ;;  %v307_v36 = vsub.f32 %v1359_v20, %v306_v24  ;;  %v327_v44 = vand.u32 4294901760, %v1381_v29  ;;  %v1402_v45 = vsub.f32 %v181_v12, %v218_v18  ;;  %s1197_s19 = scalar_lea.vmem %s1196_s17, 512 }
  0x16   : > { %s860_s20 = sshll.u32 %s1514_s30, 3  ;;  %v314_v40 = vsub.f32 %v1364_v22, %v313_v28  ;;  %v294_v42 = vand.u32 4294901760, %v293_v27  ;;  %v1106_v48 = vpack.c.bf16 %v299_v23, %v292_v21  ;;  %v321_v53 = vsub.f32 %v1370_v25, %v320_v41  ;;  %p1193_p12 = pnand %p1192_p11, %p1316_p5 }
  0x17   : > { %s169_s26 = scalar_lea.vmem %s1503_s0, %s860_s20  ;;  %1049 = vmatpush3.bf16.msra.mxu1 %v1355_v17  ;;  %1097 = vmatpush3.bf16.msra.mxu0 %v1355_v17  ;;  %v301_v43 = vand.u32 4294901760, %v300_v33  ;;  %v308_v49 = vand.u32 4294901760, %v307_v36  ;;  %v328_v55 = vsub.f32 %v1381_v29, %v327_v44  ;;  %v334_v56 = vand.u32 4294901760, %v1389_v37  ;;  %p1198_p0 = scmp.lt.s32.totalorder %s1455_s5, %s1196_s17 }
  0x18   : > { %v172_v31 = vld [vmem:[%s169_s26] sm:$0xff]  ;;  %v173_v32 = vld [vmem:[%s169_s26 + $0x8] sm:$0xff]  ;;  %1051 = vmatprep.subr.bf16.mxu1 %v1374_v26  ;;  %1099 = vmatprep.subr.bf16.mxu0 %v1374_v26  ;;  %v315_v52 = vand.u32 4294901760, %v314_v40  ;;  %v341_v57 = vand.u32 4294901760, %v1402_v45  ;;  %v1110_v63 = vpack.c.bf16 %v313_v28, %v306_v24  ;;  %v322_v0 = vand.u32 4294901760, %v321_v53  ;;  %p1194_p13 = pneg %p1193_p12  ;;  %p1199_p1 = scmp.lt.s32.totalorder %s1197_s19, %s1191_s16 }
  0x19   : > { %v191_v34 = vsel %vm189_vm0, %v172_v31, 0  ;;  %v194_v35 = vsel %vm189_vm0, %v173_v32, 0  ;;  %v1058_v54 = vpack.c.bf16 %v301_v43, %v294_v42  ;;  %v329_v1 = vand.u32 4294901760, %v328_v55 }
  0x1a   : > { %v1393_v38 = vand.u32 4294901760, %v191_v34  ;;  %v1395_v39 = vand.u32 4294901760, %v194_v35  ;;  %v1062_v62 = vpack.c.bf16 %v315_v52, %v308_v49  ;;  %v335_v2 = vsub.f32 %v1389_v37, %v334_v56  ;;  %p1200_p2 = por %p1199_p1, %p1198_p0 }
  0x1b   : > { %1053 = vmatpush3.bf16.msra.mxu1 %v1374_v26  ;;  %1101 = vmatpush3.bf16.msra.mxu0 %v1374_v26  ;;  %v342_v3 = vsub.f32 %v1402_v45, %v341_v57  ;;  %v1066_v4 = vpack.c.bf16 %v329_v1, %v322_v0  ;;  %v1114_v5 = vpack.c.bf16 %v327_v44, %v320_v41 }
  0x1c   : > { %v1405_v46 = vsub.f32 %v191_v34, %v1393_v38  ;;  %v1408_v47 = vsub.f32 %v194_v35, %v1395_v39  ;;  %1055 = vmatprep.subr.bf16.mxu1 %v1383_v30  ;;  %1103 = vmatprep.subr.bf16.mxu0 %v1383_v30  ;;  %v336_v6 = vand.u32 4294901760, %v335_v2  ;;  %v1118_v9 = vpack.c.bf16 %v341_v57, %v334_v56  ;;  %p1201_p3 = pnand %p1200_p2, %p1194_p13 }
  0x1d   : > { %v343_v7 = vand.u32 4294901760, %v342_v3  ;;  %v1074_v10 = vpack.c.bf16 %v1357_v19, %v1353_v16  ;;  %v1078_v11 = vpack.c.bf16 %v1364_v22, %v1359_v20  ;;  %v1082_v12 = vpack.c.bf16 %v1381_v29, %v1370_v25 }
  0x1e   : > { %v271_v50 = vand.u32 4294901760, %v1405_v46  ;;  %v281_v51 = vand.u32 4294901760, %v1408_v47 }
  0x1f   : > { %1057 = vmatpush3.bf16.msra.mxu1 %v1383_v30  ;;  %1105 = vmatpush3.bf16.msra.mxu0 %v1383_v30  ;;  %v1070_v8 = vpack.c.bf16 %v343_v7, %v336_v6 }
  0x20   : > { %v272_v58 = vsub.f32 %v1405_v46, %v271_v50  ;;  %1001 = vmatprep.mubr.f32.mxu0 %v271_v50  ;;  %v282_v59 = vsub.f32 %v1408_v47, %v281_v51  ;;  %1059 = vmatprep.subr.bf16.mxu1 %v1058_v54 }
  0x21   : > { %1107 = vmatprep.subr.bf16.mxu0 %v1106_v48 }
  0x22   : > { %v273_v60 = vand.u32 4294901760, %v272_v58  ;;  %v283_v61 = vand.u32 4294901760, %v282_v59  ;;  %1002 = vmatmul.mubr.f32.vlgmr.msra.gmra.mrb[0].mxu0 %v281_v51 }
  0x23   : > { %1109 = vmatpush3.bf16.msra.mxu0 %v1106_v48  ;;  %1020 = vmatprep.mubr.f32.mxu0 %v1393_v38 }
  0x24   : > { %944 = vmatprep.mubr.f32.mxu1 %v273_v60  ;;  %1111 = vmatprep.subr.bf16.mxu0 %v1110_v63 }
  0x25   : > { %945 = vmatmul.mubr.f32.vlgmr.msra.gmra.mrb[0].mxu1 %v283_v61 }
  0x26   : > { %1061 = vmatpush3.bf16.msra.mxu1 %v1058_v54  ;;  %963 = vmatprep.mubr.f32.mxu1 %v1393_v38 }
  0x27   : > { %1063 = vmatprep.subr.bf16.mxu1 %v1062_v62  ;;  %1113 = vmatpush3.bf16.msra.mxu0 %v1110_v63 }
  0x28   : > { %1115 = vmatprep.subr.bf16.mxu0 %v1114_v5 }
  0x2a   : > { %1065 = vmatpush3.bf16.msra.mxu1 %v1062_v62 }
  0x2b   : > { %1067 = vmatprep.subr.bf16.mxu1 %v1066_v4  ;;  %1117 = vmatpush3.bf16.msra.mxu0 %v1114_v5 }
  0x2c   : > { %1119 = vmatprep.subr.bf16.mxu0 %v1118_v9 }
  0x2e   : > { %1069 = vmatpush3.bf16.msra.mxu1 %v1066_v4 }
  0x2f   : > { %1071 = vmatprep.subr.bf16.mxu1 %v1070_v8  ;;  %1121 = vmatpush3.bf16.msra.mxu0 %v1118_v9 }
  0x30   : > { %1123 = vmatprep.subr.bf16.mxu0 %v1351_v13 }
  0x32   : > { %1073 = vmatpush3.bf16.msra.mxu1 %v1070_v8  ;;  %1021 = vmatmul.mubr.f32.vlgmr.msra.gmra.mrb[0].mxu0 %v1395_v39 }
  0x33   : > { %1075 = vmatprep.subr.bf16.mxu1 %v1074_v10  ;;  %1125 = vmatpush3.bf16.msra.mxu0 %v1351_v13  ;;  %v1086_v13 = vpack.c.bf16 %v1402_v45, %v1389_v37 }
  0x34   : > { %1127 = vmatprep.subr.bf16.mxu0 %v1355_v17  ;;  %1039 = vmatprep.mubr.f32.mxu0 %v1393_v38 }
  0x35   : > { %964 = vmatmul.mubr.f32.vlgmr.msra.gmra.mrb[0].mxu1 %v1395_v39 }
  0x36   : > { %1077 = vmatpush3.bf16.msra.mxu1 %v1074_v10  ;;  %982 = vmatprep.mubr.f32.mxu1 %v1405_v46 }
  0x37   : > { %1079 = vmatprep.subr.bf16.mxu1 %v1078_v11  ;;  %1129 = vmatpush3.bf16.msra.mxu0 %v1355_v17 }
  0x38   : > { %1131 = vmatprep.subr.bf16.mxu0 %v1374_v26 }
  0x3a   : > { %1081 = vmatpush3.bf16.msra.mxu1 %v1078_v11 }
  0x3b   : > { %1083 = vmatprep.subr.bf16.mxu1 %v1082_v12  ;;  %1133 = vmatpush3.bf16.msra.mxu0 %v1374_v26 }
  0x3c   : > { %1135 = vmatprep.subr.bf16.mxu0 %v1383_v30 }
  0x3e   : > { %1085 = vmatpush3.bf16.msra.mxu1 %v1082_v12 }
  0x3f   : > { %1087 = vmatprep.subr.bf16.mxu1 %v1086_v13  ;;  %1137 = vmatpush3.bf16.msra.mxu0 %v1383_v30 }
  0x42   : > { %1089 = vmatpush3.bf16.msra.mxu1 %v1086_v13  ;;  %1040 = vmatmul.mubr.f32.vlgmr.msra.gmra.mrb[0].mxu0 %v1395_v39 }
  0x45   : > { %983 = vmatmul.mubr.f32.vlgmr.msra.gmra.mrb[0].mxu1 %v1408_v47 }
 0x115   : > { %v1041_v16 = vpop.f32.mrb[0].mxu0 }
 0x116   : > { %v766_v19 = vpop.f32.mrb[1].mxu0 }
 0x118   : > { %v984_v15 = vpop.f32.mrb[0].mxu1 }
 0x119   : > { %v1138_v17 = vadd.f32 %v984_v15, %v861_v14  ;;  %v490_v18 = vpop.f32.mrb[1].mxu1 }
 0x11a   : > { %v1140_v20 = vadd.f32 %v861_v14, %v490_v18 }
 0x11b   : > { %v1139_v21 = vadd.f32 %v1138_v17, %v1041_v16 }
 0x11c   : > { %v1141_v22 = vadd.f32 %v1140_v20, %v766_v19 }
 0x11d   : > { %777 = vst [vmem:[%s164_s4 + $0x8] sm:$0xff] %v1139_v21 }
 0x11e   : > { %776 = vst [vmem:[%s164_s4] sm:$0xff] %v1141_v22 }
 0x11f   : > { %1204 = shalt.err (!%p1201_p3)
}
 0x120   : > { %s1205_s20 = scalar_lea.hbm %s1460_s9, 256  ;;  %s1209_s26 = scalar_lea.hbm %s1506_s3, 512 }
 0x121   : > { %p1206_p4 = scmp.ne.s32.totalorder %s1460_s9, %s1205_s20  ;;  %p1210_p9 = scmp.lt.u32.totalorder %s1460_s9, %s1506_s3 }
 0x122   : > { %p1211_p10 = scmp.lt.u32.totalorder %s1209_s26, %s1205_s20  ;;  %p1213_p12 = scmp.lt.u32.totalorder %s1205_s20, %s1460_s9 }
 0x123   : > { %p1207_p7 = pnand %p1206_p4, %p1316_p5 }
 0x124   : > { %p1212_p11 = por %p1211_p10, %p1210_p9 }
 0x125   : > { %p1208_p8 = pneg %p1207_p7 }
 0x126   : > { %p1214_p13 = por %p1213_p12, %p1212_p11 }
 0x128   : > { %p1215_p0 = pnand %p1214_p13, %p1208_p8 }
 0x12a   : > { %1218 = shalt.err (!%p1215_p0)
}
 0x12b   : > { %s1256_s29 = smov 128   ;;  %s1257_s30 = smov 8  }
 0x12c   : > { %1150 = dma.vmem_to_hbm [thread:$0]  (%p1316_p5), %s1455_s5, 256, %s1460_s9, %s1462_s10, %s1256_s29, %s1256_s29, %s1257_s30  }
 0x12d PF: > { %p1156_p1 = scmp.ge.s32.totalorder %s1253_s15, 2  ;;  %s807_s4 = sand.u32 1, %s1241_s12  }
 0x12e   : > { %s808_s6 = scalar_lea.sflag [#allocation3], %s807_s4 }
 0x12f   : > { %p1153_p2 = pnand %p1156_p1, %p1320_p6 }
 0x131   : > { %1236 = dma.done.wait (!%p1153_p2), %s808_s6, 256  }
 0x132   : > { %1238 = vsyncadd (!%p1153_p2), %s808_s6, 4294967040  ;;  %p13_p3 = scmp.ge.s32.totalorder %s1303_s18, 4   ;;  %s1509_s12 = smov %s1245_s13 }
 0x133   : > { %s1510_s13 = smov %s1249_s14  ;;  %s1511_s14 = smov %s1314_s21 }
 0x134   : > { %s1512_s15 = smov %s1303_s18  ;;  %15 = sbr.rel (!%p13_p3) target bundleno = 3 (0x3), region = 67 }
 0x13b   :  { %813 = vsyncpa [#allocation3], 1 }
 0x13c   :  { %815 = vsyncpa [#allocation3 + $0x1], 1 }

</bundles_post_ra>
